<compile_context>
chip_gen: v7x
topology: tpu7x:2x2x1
jax: 0.10.0
libtpu: 0.0.40
codegen_flags: <defaults>
</compile_context>

<pallas_src>
import functools

import jax
import jax.numpy as jnp
from jax.experimental import pallas as pl
from jax.experimental.pallas import tpu as pltpu


def _hinge_partial_kernel(pos_ref, neg_ref, out_ref, *, margin, total_rows,
                          tile_rows, needs_mask):
    """One grid step: hinge over a (tile_rows, D) tile -> (8, D) partial sums.

    Row 0 of the output tile holds the per-lane column sums; rows 1..7 are
    zero. The wrapper sums everything and divides by the element count.
    """
    pos = pos_ref[...].astype(jnp.float32)
    neg = neg_ref[...].astype(jnp.float32)
    hinge = jnp.maximum(neg - pos + margin, 0.0)

    if needs_mask:  # static (trace-time) flag: only emitted for ragged tails
        i = pl.program_id(0)
        row_ids = jax.lax.broadcasted_iota(jnp.int32, hinge.shape, 0)
        valid = (i * tile_rows + row_ids) < total_rows
        hinge = jnp.where(valid, hinge, 0.0)

    col_sums = jnp.sum(hinge, axis=0, keepdims=True)            # (1, D)
    d = col_sums.shape[1]
    rows8 = jax.lax.broadcasted_iota(jnp.int32, (8, d), 0)
    out_ref[...] = jnp.where(rows8 == 0,
                             jnp.broadcast_to(col_sums, (8, d)),
                             0.0)


def _pick_tile_rows(n_rows, row_bytes, target_block_bytes=4 << 20):
    """Pick a row-tile so each input block is ~4 MiB (8-aligned), or the
    whole array if it is smaller than that."""
    rows = max(8, target_block_bytes // max(row_bytes, 1))
    rows = max(8, (rows // 8) * 8)          # keep the sublane dim 8-aligned
    if rows >= n_rows:
        return int(n_rows)                   # single full-extent block
    return int(rows)


def my_hinge_loss(positives, negatives, margin=0.0):
    assert positives.shape == negatives.shape, "shape mismatch"
    # Flatten to 2-D (rows, lanes) so the last dim maps onto the lane axis.
    if positives.ndim == 1:
        positives = positives.reshape(1, -1)
        negatives = negatives.reshape(1, -1)
    elif positives.ndim > 2:
        positives = positives.reshape(-1, positives.shape[-1])
        negatives = negatives.reshape(-1, negatives.shape[-1])

    B, D = positives.shape
    itemsize = positives.dtype.itemsize
    tile_rows = _pick_tile_rows(B, D * itemsize)
    num_blocks = (B + tile_rows - 1) // tile_rows
    needs_mask = (num_blocks * tile_rows) != B

    # VMEM budget: 2 inputs x 2 pipeline buffers x block + small output bufs
    # + slack. Capped at 48 MiB so it is also safe on v7x (64 MiB per TC).
    block_bytes = tile_rows * D * itemsize
    vmem_needed = 4 * block_bytes + 2 * (8 * D * 4) + (4 << 20)
    vmem_limit = int(min(max(vmem_needed, 16 << 20), 48 << 20))

    kernel = functools.partial(
        _hinge_partial_kernel,
        margin=float(margin),
        total_rows=B,
        tile_rows=tile_rows,
        needs_mask=needs_mask,
    )

    partials = pl.pallas_call(
        kernel,
        out_shape=jax.ShapeDtypeStruct((num_blocks * 8, D), jnp.float32),
        grid_spec=pltpu.PrefetchScalarGridSpec(
            num_scalar_prefetch=0,
            grid=(num_blocks,),
            in_specs=[
                pl.BlockSpec((tile_rows, D), lambda i: (i, 0)),
                pl.BlockSpec((tile_rows, D), lambda i: (i, 0)),
            ],
            out_specs=pl.BlockSpec((8, D), lambda i: (i, 0)),
        ),
        compiler_params=pltpu.CompilerParams(
            dimension_semantics=("parallel",),
            vmem_limit_bytes=vmem_limit,
        ),
    )(positives, negatives)

    # Tiny final reduction + mean in plain JAX (partials is num_blocks*8 x D,
    # i.e. ~1/tile_rows of the input size).
    return jnp.sum(partials) / float(B * D)


if __name__ == "__main__":
    key = jax.random.PRNGKey(0)
    kp, kn = jax.random.split(key)

    # Primary small case: (16, 128) f32, margin = 0.0 (module defaults).
    B, D = 16, 128
    positives = jax.random.normal(kp, (B, D), dtype=jnp.float32)
    negatives = jax.random.normal(kn, (B, D), dtype=jnp.float32)

    loss = my_hinge_loss(positives, negatives, margin=0.0)
    loss = jax.block_until_ready(loss)
    ref = jnp.mean(jnp.maximum(negatives - positives + 0.0, 0.0))
    assert jnp.allclose(loss, ref, rtol=1e-5, atol=1e-6), (loss, ref)

    # Second check: batch not a multiple of 8 and nonzero margin.
    kp2, kn2 = jax.random.split(jax.random.PRNGKey(1))
    B2, D2 = 20, 256
    p2 = jax.random.normal(kp2, (B2, D2), dtype=jnp.float32)
    n2 = jax.random.normal(kn2, (B2, D2), dtype=jnp.float32)
    loss2 = jax.block_until_ready(my_hinge_loss(p2, n2, margin=0.2))
    ref2 = jnp.mean(jnp.maximum(n2 - p2 + 0.2, 0.0))
    assert jnp.allclose(loss2, ref2, rtol=1e-5, atol=1e-6), (loss2, ref2)

    print("KERNEL_OK")
</pallas_src>

<mosaic_0001>
module attributes {stable_mosaic.version = 11 : i64} {
  func.func @_hinge_partial_kernel(%arg0: i32, %arg1: memref<16x128xf32, #tpu.memory_space<vmem>>, %arg2: memref<16x128xf32, #tpu.memory_space<vmem>>, %arg3: memref<8x128xf32, #tpu.memory_space<vmem>>) attributes {dimension_semantics = [#tpu.dimension_semantics<parallel>], iteration_bounds = array<i64: 1>, scalar_prefetch = 0 : i64, scratch_operands = 0 : i64, tpu.core_type = #tpu.core_type<tc>, window_params = [{transform_indices = @transform_0, window_bounds = array<i64: 16, 128>}, {transform_indices = @transform_1, window_bounds = array<i64: 16, 128>}, {transform_indices = @transform_2, window_bounds = array<i64: 8, 128>}]} {
    %c0 = arith.constant 0 : index
    %c0_0 = arith.constant 0 : index
    %0 = vector.load %arg1[%c0, %c0_0] : memref<16x128xf32, #tpu.memory_space<vmem>>, vector<16x128xf32>
    %c0_1 = arith.constant 0 : index
    %c0_2 = arith.constant 0 : index
    %1 = vector.load %arg2[%c0_1, %c0_2] : memref<16x128xf32, #tpu.memory_space<vmem>>, vector<16x128xf32>
    %2 = arith.subf %1, %0 : vector<16x128xf32>
    %cst = arith.constant 0.000000e+00 : f32
    %3 = vector.broadcast %cst : f32 to vector<16x128xf32>
    %4 = arith.addf %2, %3 : vector<16x128xf32>
    %cst_3 = arith.constant 0.000000e+00 : f32
    %5 = vector.broadcast %cst_3 : f32 to vector<16x128xf32>
    %6 = arith.maximumf %4, %5 : vector<16x128xf32>
    %cst_4 = arith.constant dense<0.000000e+00> : vector<128xf32>
    %7 = vector.multi_reduction <add>, %6, %cst_4 [0] : vector<16x128xf32> to vector<128xf32>
    %8 = vector.shape_cast %7 : vector<128xf32> to vector<1x128xf32>
    %9 = tpu.iota {dimensions = array<i32: 0>} : vector<8x128xi32>
    %c0_i32 = arith.constant 0 : i32
    %10 = vector.broadcast %c0_i32 : i32 to vector<8x128xi32>
    %11 = arith.cmpi eq, %9, %10 : vector<8x128xi32>
    %12 = vector.shape_cast %8 : vector<1x128xf32> to vector<1x128xf32>
    %13 = vector.broadcast %12 : vector<1x128xf32> to vector<8x128xf32>
    %cst_5 = arith.constant 0.000000e+00 : f32
    %14 = vector.broadcast %cst_5 : f32 to vector<8x128xf32>
    %15 = arith.select %11, %13, %14 : vector<8x128xi1>, vector<8x128xf32>
    %c0_6 = arith.constant 0 : index
    %c0_7 = arith.constant 0 : index
    %16 = vector.load %arg3[%c0_6, %c0_7] : memref<8x128xf32, #tpu.memory_space<vmem>>, vector<8x128xf32>
    tpu.vector_store %arg3[%c0_6, %c0_7], %15 {strides = array<i32>} : memref<8x128xf32, #tpu.memory_space<vmem>>, vector<8x128xf32>,
    return
  }
  func.func @transform_0(%arg0: i32) -> (i32, i32) {
    %c0_i32 = arith.constant 0 : i32
    %c0_i32_0 = arith.constant 0 : i32
    return %arg0, %c0_i32 : i32, i32
  }
  func.func @transform_1(%arg0: i32) -> (i32, i32) {
    %c0_i32 = arith.constant 0 : i32
    %c0_i32_0 = arith.constant 0 : i32
    return %arg0, %c0_i32 : i32, i32
  }
  func.func @transform_2(%arg0: i32) -> (i32, i32) {
    %c0_i32 = arith.constant 0 : i32
    %c0_i32_0 = arith.constant 0 : i32
    return %arg0, %c0_i32 : i32, i32
  }
}

</mosaic_0001>

<bundles_post_ra>
// kernel: tpu_custom_call.1
= control target key start
LH: loop header
LB: loop body
LE: loop exit
PB: predicated region body
PF: predicated region fallthrough
CT: control target
= control target key end

     0   :  { %7 = vsyncpa [#allocation3], 0  ;;  %s211_s0 = inlined_call_operand.hbm [shape: f32[16,128], index: 0, kind: input, shape index: {}]   ;;  %s212_s1 = inlined_call_operand.hbm [shape: f32[16,128], index: 1, kind: input, shape index: {}]   ;;  %s213_s2 = inlined_call_operand.hbm [shape: f32[8,128], index: 2, kind: output, shape index: {}]  }
   0x1   :  { %8 = vsyncpa [#allocation6], 0 }
   0x2   :  { %9 = vsyncpa [#allocation4], 0  ;;  %s155_s9 = smov [#allocation2]   ;;  %s83_s13 = scalar_lea.hbm %s211_s0, 256 }
   0x3   :  { %s15_s10 = sshll.u32 %s155_s9, 4  ;;  %p84_p0 = scmp.ne.s32.totalorder %s211_s0, %s83_s13  ;;  %s16_s10 = int_to_ptr.vmem [resolvable:$true] %s15_s10 }
   0x4   :  { %p87_p1 = scmp.lt.u32.totalorder %s83_s13, %s211_s0 }
   0x6   :  { %p89_p2 = pnand %p87_p1, %p84_p0 }
   0x8   :  { %92 = shalt.err (!%p89_p2)
}
   0x9   :  { %s93_s18 = scalar_lea.vmem %s16_s10, 256  ;;  %p98_p4 = scmp.lt.s32.totalorder %s16_s10, %s16_s10 }
   0xa   :  { %p94_p3 = scmp.ne.s32.totalorder %s16_s10, %s93_s18  ;;  %p99_p5 = scmp.lt.s32.totalorder %s93_s18, %s93_s18 }
   0xc   :  { %p100_p6 = por %p99_p5, %p98_p4 }
   0xe   :  { %p101_p7 = pnand %p100_p6, %p94_p3 }
  0x10   :  { %104 = shalt.err (!%p101_p7)
}
  0x11   :  { %s156_s19 = smov 128   ;;  %s157_s20 = smov 8  }
  0x12   :  { %21 = dma.hbm_to_vmem [thread:$0]  %s211_s0, 256, %s16_s10, [#allocation3], %s156_s19, %s156_s19, %s157_s20  }
  0x13   :  { %s158_s23 = smov [#allocation5]   ;;  %s105_s27 = scalar_lea.hbm %s212_s1, 256 }
  0x14   :  { %s27_s24 = sshll.u32 %s158_s23, 4  ;;  %p106_p8 = scmp.ne.s32.totalorder %s212_s1, %s105_s27  ;;  %s28_s24 = int_to_ptr.vmem [resolvable:$true] %s27_s24 }
  0x15   :  { %p109_p9 = scmp.lt.u32.totalorder %s105_s27, %s212_s1 }
  0x17   :  { %p111_p10 = pnand %p109_p9, %p106_p8 }
  0x19   :  { %114 = shalt.err (!%p111_p10)
}
  0x1a   :  { %s115_s4 = scalar_lea.vmem %s28_s24, 256  ;;  %p120_p12 = scmp.lt.s32.totalorder %s28_s24, %s28_s24 }
  0x1b   :  { %p116_p11 = scmp.ne.s32.totalorder %s28_s24, %s115_s4  ;;  %p121_p13 = scmp.lt.s32.totalorder %s115_s4, %s115_s4 }
  0x1d   :  { %p122_p0 = por %p121_p13, %p120_p12 }
  0x1f   :  { %p123_p1 = pnand %p122_p0, %p116_p11 }
  0x21   :  { %126 = shalt.err (!%p123_p1)
}
  0x22   :  { %33 = dma.hbm_to_vmem [thread:$0]  %s212_s1, 256, %s28_s24, [#allocation6], %s156_s19, %s156_s19, %s157_s20  }
  0x23   :  { %149 = dma.done.wait [#allocation3], 256  }
  0x24   :  { %150 = vsyncadd [#allocation3], 4294967040 }
  0x25   :  { %151 = dma.done.wait [#allocation6], 256  }
  0x26   :  { %152 = vsyncadd [#allocation6], 4294967040  ;;  %v40_v0 = vld [vmem:[#allocation2] sm:$0xff]  ;;  %v41_v1 = vld [vmem:[#allocation2 + $0x8] sm:$0xff]  ;;  %v57_v10 = vlaneseq  ;;  %s159_s1 = smov [#allocation7]  }
  0x27   :  { %v42_v2 = vld [vmem:[#allocation5] sm:$0xff]  ;;  %v43_v3 = vld [vmem:[#allocation5 + $0x8] sm:$0xff]  ;;  %s68_s6 = sshll.u32 %s159_s1, 4  ;;  %s69_s6 = int_to_ptr.vmem [resolvable:$true] %s68_s6 }
  0x28   :  { %v44_v4 = vsub.f32 %v42_v2, %v40_v0  ;;  %v45_v5 = vsub.f32 %v43_v3, %v41_v1  ;;  %v58_v13 = vshrl.u32 %v57_v10, 7  ;;  %s127_s7 = scalar_lea.vmem %s69_s6, 128  ;;  %p132_p3 = scmp.lt.s32.totalorder %s69_s6, %s69_s6 }
  0x29   :  { %p128_p2 = scmp.ne.s32.totalorder %s69_s6, %s127_s7  ;;  %p133_p4 = scmp.lt.s32.totalorder %s127_s7, %s127_s7 }
  0x2a   :  { %v48_v6 = vmax.f32 %v44_v4, 0.0  ;;  %v49_v7 = vmax.f32 %v45_v5, 0.0  ;;  %vm59_vm0 = vcmp.eq.s32.totalorder %v58_v13, 0 }
  0x2b   :  { %p134_p5 = por %p133_p4, %p132_p3 }
  0x2c   :  { %v50_v8 = vadd.f32 %v49_v7, %v48_v6 }
  0x2d   :  { %p135_p6 = pnand %p134_p5, %p128_p2 }
  0x2e   :  { %v51_v9 = vrot.slane %v50_v8, 4 }
  0x30   :  { %v52_v11 = vadd.f32 %v51_v9, %v50_v8 }
  0x32   :  { %v53_v12 = vrot.slane %v52_v11, 2 }
  0x34   :  { %v54_v14 = vadd.f32 %v53_v12, %v52_v11 }
  0x36   :  { %v55_v15 = vrot.slane %v54_v14, 1 }
  0x38   :  { %v56_v16 = vadd.f32 %v55_v15, %v54_v14 }
  0x3a   :  { %v60_v17 = vsel %vm59_vm0, %v56_v16, 0.0 }
  0x3b   :  { %61 = vst [vmem:[#allocation7] sm:$0xff] %v60_v17 }
  0x3c   :  { %138 = shalt.err (!%p135_p6)
}
  0x3d   :  { %s139_s10 = scalar_lea.hbm %s213_s2, 128 }
  0x3e   :  { %p140_p7 = scmp.ne.s32.totalorder %s213_s2, %s139_s10  ;;  %p143_p8 = scmp.lt.u32.totalorder %s139_s10, %s213_s2 }
  0x40   :  { %p145_p9 = pnand %p143_p8, %p140_p7 }
  0x42   :  { %148 = shalt.err (!%p145_p9)
}
  0x43   :  { %71 = dma.vmem_to_hbm [thread:$0]  %s69_s6, 128, %s213_s2, [#allocation4]  }
  0x44   :  { %153 = dma.done.wait [#allocation4], 128  }
  0x45   :  { %154 = vsyncadd [#allocation4], 4294967168 }
  0x46   :  { %75 = vsyncpa [#allocation3], 1 }
  0x47   :  { %76 = vsyncpa [#allocation6], 1 }
  0x48   :  { %77 = vsyncpa [#allocation4], 1 }

</bundles_post_ra>
